<compile_context>
chip_gen: v7x
topology: tpu7x:2x2x1
jax: 0.10.0
libtpu: 0.0.40
codegen_flags: <defaults>
</compile_context>

<pallas_src>
import functools

import jax
import jax.numpy as jnp
import numpy as np
from jax.experimental import pallas as pl
from jax.experimental.pallas import tpu as pltpu

_MAX_TILE_ROWS = 4096                               # rows of x per grid step
_MXU_PRECISION = jax.lax.Precision.HIGHEST          # full-f32 matmuls


def _round_up(x, m):
    return ((x + m - 1) // m) * m


def _choose_tile_rows(n):
    """Rows per grid step: large enough to amortize per-step overhead, a
    multiple of 8, and (when tiling) an even tile count so the single
    parallel grid axis balances across v7x's two TensorCores."""
    n8 = _round_up(max(n, 8), 8)
    if n8 <= _MAX_TILE_ROWS:
        return n8
    num_tiles = _round_up(pl.cdiv(n8, _MAX_TILE_ROWS), 2)
    return _round_up(pl.cdiv(n8, num_tiles), 8)


# ----------------------------------------------------------------------------
# Fused Pallas kernel: all DplModels + wNN ensemble for one tile of rows
# ----------------------------------------------------------------------------
def _fused_handler_kernel(x_ref, wpack_ref, bpack_ref, w2blk_ref, b2row_ref,
                          out_ref, *, num_models, hid_cols, with_ensemble):
    """Columns of out_ref (per row of x):
         [0:M)       per-model preds sigmoid(relu(x@W1_m + b1_m) @ W2_m + b2_m)
         [M:2M)      wNN softmax weights                         (ensemble only)
         [2M:2M+1)   ensemble pred  sum_m w_m * pred_m           (ensemble only)
    """
    m = num_models
    x = x_ref[...]                                              # [TN, F]

    # Layer 1 of every model + the wNN logits: ONE lane-aligned MXU matmul.
    z = jnp.dot(x, wpack_ref[...],
                preferred_element_type=jnp.float32,
                precision=_MXU_PRECISION)
    z = z + bpack_ref[...]                                      # [TN, HP]

    # Per-model heads as one block-diagonal MXU matmul (no unaligned 32-lane
    # slicing, no per-model XLU reductions).
    h1 = jnp.maximum(z[:, :hid_cols], 0.0)                      # [TN, HP1] aligned
    head = jnp.dot(h1, w2blk_ref[...],
                   preferred_element_type=jnp.float32,
                   precision=_MXU_PRECISION) + b2row_ref[...]   # [TN, 128]
    preds = jax.nn.sigmoid(head)                                # cols >= M unused
    out_ref[:, 0:m] = preds[:, 0:m]

    if with_ensemble:
        # wNN logits live in their own 128-lane-aligned block; padded lanes were
        # biased to -1e30 at pack time so a full-vreg softmax gives them weight 0.
        logits = z[:, hid_cols:]                                # [TN, 128] aligned
        lmax = jnp.max(logits, axis=-1, keepdims=True)
        e = jnp.exp(logits - lmax)
        weights = e / jnp.sum(e, axis=-1, keepdims=True)        # exact softmax
        # pad lanes contribute 0 (weight 0 * sigmoid(0)=0.5).
        ens = jnp.sum(weights * preds, axis=-1, keepdims=True)  # [TN, 1]
        out_ref[:, m:2 * m] = weights[:, 0:m]
        out_ref[:, 2 * m:2 * m + 1] = ens


@functools.partial(jax.jit,
                   static_argnames=("num_models", "hid_cols", "with_ensemble"))
def fused_handler_forward(x2d, w_packed, b_packed, w2_block, b2_row, *,
                          num_models, hid_cols, with_ensemble):
    n, f = x2d.shape
    hp = w_packed.shape[1]
    headp = w2_block.shape[1]
    out_w = _round_up(2 * num_models + 1 if with_ensemble else num_models, 8)
    tile_n = _choose_tile_rows(n)
    grid = (pl.cdiv(n, tile_n),)

    kernel = functools.partial(
        _fused_handler_kernel, num_models=num_models, hid_cols=hid_cols,
        with_ensemble=with_ensemble)

    cost = pl.CostEstimate(
        flops=2 * n * f * hp + 2 * n * hid_cols * headp + 8 * n * headp,
        transcendentals=n * (headp + (128 if with_ensemble else 0)),
        bytes_accessed=4 * (n * f + n * out_w + f * hp + hp
                            + hid_cols * headp + headp),
    )

    return pl.pallas_call(
        kernel,
        out_shape=jax.ShapeDtypeStruct((n, out_w), jnp.float32),
        grid=grid,
        in_specs=[
            pl.BlockSpec((tile_n, f), lambda i: (i, 0)),        # x rows (streamed)
            pl.BlockSpec((f, hp), lambda i: (0, 0)),            # W1|Ww pack (resident)
            pl.BlockSpec((1, hp), lambda i: (0, 0)),            # b1|bw|-1e30 pad (resident)
            pl.BlockSpec((hid_cols, headp), lambda i: (0, 0)),  # block-diag W2 (resident)
            pl.BlockSpec((1, headp), lambda i: (0, 0)),         # head biases (resident)
        ],
        out_specs=pl.BlockSpec((tile_n, out_w), lambda i: (i, 0)),
        compiler_params=pltpu.CompilerParams(
            dimension_semantics=("parallel",),
            vmem_limit_bytes=32 * 1024 * 1024),
        cost_estimate=cost,
    )(x2d, w_packed, b_packed, w2_block, b2_row)


# ----------------------------------------------------------------------------
# ModelHandler (JAX/Pallas version)
# ----------------------------------------------------------------------------
class ModelHandler:
    """JAX/Pallas re-implementation of dMG ModelHandler's forward pass.

    Owns one parameterization-MLP "DplModel" per physics model name plus an
    ensemble-weighting NN (wNN) when multimodel_type == 'nn_parallel'.  All
    submodels and the ensemble are evaluated in a single fused Pallas kernel.
    """

    def __init__(self, config, device=None, verbose=False):
        self.config = config
        self.name = "Differentiable Model Handler"
        self.verbose = verbose
        self.device = device if device is not None else config.get("device", "tpu")
        self.multimodel_type = config["multimodel_type"]
        self.with_ensemble = self.multimodel_type in ["nn_parallel"]
        self.target_name = config["train"]["target"][0]
        self.input_size = config["delta_model"]["nn_model"]["input_size"]
        self.hidden_size = config["delta_model"]["nn_model"]["hidden_size"]
        self.models = self.list_models()
        self.model_dict = {}
        self._init_models()
        self._pack_params()
        self.output_dict = {}
        self.weights = {}
        self.loss_dict = dict.fromkeys(self.models, 0)
        # TODO(synk): calc_loss / RangeBoundLoss / save_model are training-time
        # utilities outside the forward pass; not reimplemented here.

    def list_models(self):
        models = list(self.config["delta_model"]["phy_model"]["model"])
        if self.multimodel_type is None and len(models) > 1:
            raise ValueError(
                "Multiple models specified, but ensemble type is 'none'.")
        if self.with_ensemble:
            models.append("wNN")
        return models

    def _init_models(self):
        # TODO(synk): checkpoint loading (load_model / torch.load) has no
        # Pallas equivalent; parameters are synthesized deterministically
        # (equivalent to epoch 0 "new model").
        f, h = self.input_size, self.hidden_size
        key = jax.random.PRNGKey(42)
        phy = [name for name in self.models if name != "wNN"]
        for name in phy:
            key, k1, k2 = jax.random.split(key, 3)
            self.model_dict[name] = {
                "w1": jax.random.normal(k1, (f, h), jnp.float32) * 0.1,
                "b1": jnp.zeros((1, h), jnp.float32),
                "w2": jax.random.normal(k2, (h, 1), jnp.float32) * 0.1,
                "b2": jnp.zeros((1, 1), jnp.float32),
            }
        if self.with_ensemble:
            key, kw = jax.random.split(key)
            self.ensemble_params = {
                "ww": jax.random.normal(kw, (f, len(phy)), jnp.float32) * 0.1,
                "bw": jnp.zeros((1, len(phy)), jnp.float32),
            }

    def _pack_params(self):
        """Pack per-model W1/b1 (+ wNN Ww/bw) into one lane-aligned slab and
        the per-model heads into a block-diagonal [HP1, 128] matrix."""
        phy = [name for name in self.models if name != "wNN"]
        f, h, n_models = self.input_size, self.hidden_size, len(phy)
        hid_cols = _round_up(n_models * h, 128)          # hidden region (aligned)
        headp = _round_up(max(n_models, 1), 128)         # head output lanes
        hp = hid_cols + (128 if self.with_ensemble else 0)

        w_packed = np.zeros((f, hp), np.float32)
        b_packed = np.zeros((1, hp), np.float32)
        w2_block = np.zeros((hid_cols, headp), np.float32)
        b2_row = np.zeros((1, headp), np.float32)
        for i, name in enumerate(phy):
            p = self.model_dict[name]
            w_packed[:, i * h:(i + 1) * h] = np.asarray(p["w1"])
            b_packed[:, i * h:(i + 1) * h] = np.asarray(p["b1"])
            w2_block[i * h:(i + 1) * h, i] = np.asarray(p["w2"][:, 0])
            b2_row[0, i] = float(p["b2"][0, 0])
        if self.with_ensemble:
            w_packed[:, hid_cols:hid_cols + n_models] = np.asarray(
                self.ensemble_params["ww"])
            b_packed[:, hid_cols:hid_cols + n_models] = np.asarray(
                self.ensemble_params["bw"])
            # Dead wNN logit lanes -> -1e30 so the full-vreg softmax zeroes them.
            b_packed[:, hid_cols + n_models:] = -1e30

        self.hid_cols = hid_cols
        self.packed = {
            "w_packed": jnp.asarray(w_packed),
            "b_packed": jnp.asarray(b_packed),
            "w2_block": jnp.asarray(w2_block),
            "b2_row": jnp.asarray(b2_row),
        }

    def forward(self, dataset_dict, eval=False):
        # TODO(synk): eval only disables grads in torch; inference math is
        # identical here so it is a no-op.
        x = dataset_dict["x_nn"]                     # [T, B, F]
        t, b, f = x.shape
        x2d = x.reshape(t * b, f)
        names = [name for name in self.models if name != "wNN"]
        n_models = len(names)

        out2d = fused_handler_forward(
            x2d, self.packed["w_packed"], self.packed["b_packed"],
            self.packed["w2_block"], self.packed["b2_row"],
            num_models=n_models, hid_cols=self.hid_cols,
            with_ensemble=self.with_ensemble)

        self.output_dict = {
            name: {self.target_name: out2d[:, i:i + 1].reshape(t, b, 1)}
            for i, name in enumerate(names)
        }
        if self.with_ensemble:
            self.weights = {
                name: out2d[:, n_models + i].reshape(t, b)
                for i, name in enumerate(names)
            }
            self.ensemble_output_dict = {
                self.target_name: out2d[:, 2 * n_models:2 * n_models + 1]
                .reshape(t, b, 1)
            }
            return {names[0]: self.ensemble_output_dict}
        return self.output_dict

    __call__ = forward


# ----------------------------------------------------------------------------
# Demo + sanity check
# ----------------------------------------------------------------------------
if __name__ == "__main__":
    F, H = 32, 32
    base_cfg = {
        "model_path": "",            # unused (synthetic init, no checkpoints)
        "device": "tpu",
        "mode": "train",
        "multimodel_type": "nn_parallel",
        "train": {"target": ["flow_sim"], "start_epoch": 0},
        "test": {"test_epoch": 0},
        "multimodel": {"use_rb_loss": False},
        "delta_model": {
            "phy_model": {"model": ["HBV", "PRMS"]},
            "nn_model": {"input_size": F, "hidden_size": H},
        },
    }

    HP = jax.lax.Precision.HIGHEST

    def reference(handler, x2d):
        phy = [name for name in handler.models if name != "wNN"]
        preds = []
        for name in phy:
            p = handler.model_dict[name]
            hid = jnp.maximum(jnp.dot(x2d, p["w1"], precision=HP) + p["b1"], 0.0)
            preds.append(jax.nn.sigmoid(
                jnp.dot(hid, p["w2"], precision=HP) + p["b2"]))
        preds = jnp.concatenate(preds, axis=-1)
        if not handler.with_ensemble:
            return preds, None, None
        ep = handler.ensemble_params
        logits = jnp.dot(x2d, ep["ww"], precision=HP) + ep["bw"]
        w = jax.nn.softmax(logits, axis=-1)
        ens = jnp.sum(w * preds, axis=-1, keepdims=True)
        return preds, w, ens

    # Tolerance covers possible MXU (full-f32 multi-pass) vs XLA matmul
    # rounding differences; outputs are sigmoid/softmax values in [0, 1].
    def _close(a, b, label):
        a = jnp.asarray(a).reshape(-1)
        b = jnp.asarray(b).reshape(-1)
        good = bool(jnp.allclose(a, b, atol=5e-3, rtol=5e-3))
        if not good:
            print(f"MISMATCH {label}: max|diff| = "
                  f"{float(jnp.max(jnp.abs(a - b)))}")
        return good

    ok = True

    # --- multimodel ensemble (nn_parallel): 2 DplModels + wNN ----------------
    handler = ModelHandler(base_cfg, device="tpu", verbose=False)
    phy_names = [name for name in handler.models if name != "wNN"]
    # (8, 4): single-tile grid.  (50, 100): N = 5000 > _MAX_TILE_ROWS, so a
    # 2-tile grid with a partial final block (exercises row masking).
    for (T, B) in [(8, 4), (50, 100)]:
        kx, kt = jax.random.split(jax.random.fold_in(jax.random.PRNGKey(0), T))
        dataset_dict = {
            "x_nn": jax.random.normal(kx, (T, B, F), jnp.float32),
            "target": jax.random.normal(kt, (T, B, 1), jnp.float32),
        }
        out = handler.forward(dataset_dict, eval=True)
        ens = out[phy_names[0]]["flow_sim"]
        jax.block_until_ready(ens)

        x2d = dataset_dict["x_nn"].reshape(T * B, F)
        preds_ref, w_ref, ens_ref = reference(handler, x2d)
        for i, name in enumerate(phy_names):
            ok &= _close(handler.output_dict[name]["flow_sim"],
                         preds_ref[:, i], f"pred[{name}] T={T}")
            ok &= _close(handler.weights[name], w_ref[:, i],
                         f"weight[{name}] T={T}")
        ok &= _close(ens, ens_ref, f"ensemble T={T}")

    # --- single model, no ensemble -------------------------------------------
    single_cfg = {
        **base_cfg,
        "multimodel_type": None,
        "delta_model": {"phy_model": {"model": ["HBV"]},
                        "nn_model": {"input_size": F, "hidden_size": H}},
    }
    handler1 = ModelHandler(single_cfg, device="tpu", verbose=False)
    kx, _ = jax.random.split(jax.random.PRNGKey(1))
    ds = {"x_nn": jax.random.normal(kx, (8, 4, F), jnp.float32)}
    out1 = handler1.forward(ds, eval=True)
    jax.block_until_ready(out1["HBV"]["flow_sim"])
    preds_ref1, _, _ = reference(handler1, ds["x_nn"].reshape(32, F))
    ok &= _close(out1["HBV"]["flow_sim"], preds_ref1[:, 0], "single-model pred")

    assert ok, "Pallas fused ModelHandler output mismatch vs pure-JAX reference"
    print("KERNEL_OK")
</pallas_src>

<mosaic_0001>
module attributes {stable_mosaic.version = 11 : i64} {
  func.func @_fused_handler_kernel(%arg0: i32, %arg1: memref<32x32xf32, #tpu.memory_space<vmem>>, %arg2: memref<32x256xf32, #tpu.memory_space<vmem>>, %arg3: memref<1x256xf32, #tpu.memory_space<vmem>>, %arg4: memref<128x128xf32, #tpu.memory_space<vmem>>, %arg5: memref<1x128xf32, #tpu.memory_space<vmem>>, %arg6: memref<32x8xf32, #tpu.memory_space<vmem>>) attributes {dimension_semantics = [#tpu.dimension_semantics<parallel>], iteration_bounds = array<i64: 1>, scalar_prefetch = 0 : i64, scratch_operands = 0 : i64, tpu.core_type = #tpu.core_type<tc>, window_params = [{transform_indices = @transform_0, window_bounds = array<i64: 32, 32>}, {pipeline_mode = #tpu.pipeline_mode<synchronous>, transform_indices = @transform_1, window_bounds = array<i64: 32, 256>}, {pipeline_mode = #tpu.pipeline_mode<synchronous>, transform_indices = @transform_2, window_bounds = array<i64: 1, 256>}, {pipeline_mode = #tpu.pipeline_mode<synchronous>, transform_indices = @transform_3, window_bounds = array<i64: 128, 128>}, {pipeline_mode = #tpu.pipeline_mode<synchronous>, transform_indices = @transform_4, window_bounds = array<i64: 1, 128>}, {transform_indices = @transform_5, window_bounds = array<i64: 32, 8>}]} {
    %c0 = arith.constant 0 : index
    %c0_0 = arith.constant 0 : index
    %0 = vector.load %arg1[%c0, %c0_0] : memref<32x32xf32, #tpu.memory_space<vmem>>, vector<32x32xf32>
    %c0_1 = arith.constant 0 : index
    %c0_2 = arith.constant 0 : index
    %1 = vector.load %arg2[%c0_1, %c0_2] : memref<32x256xf32, #tpu.memory_space<vmem>>, vector<32x256xf32>
    %cst = arith.constant dense<0.000000e+00> : vector<32x256xf32>
    %2 = tpu.matmul %0, %1, %cst {dimension_numbers = #tpu.dot_dimension_numbers<[1], [0], [0], [1], [0, 0, 1, 1], [], []>, precision = #tpu.contract_precision<fp32>} : vector<32x32xf32>, vector<32x256xf32>, vector<32x256xf32> -> vector<32x256xf32>
    %c0_3 = arith.constant 0 : index
    %c0_4 = arith.constant 0 : index
    %3 = vector.load %arg3[%c0_3, %c0_4] : memref<1x256xf32, #tpu.memory_space<vmem>>, vector<1x256xf32>
    %4 = vector.broadcast %3 : vector<1x256xf32> to vector<32x256xf32>
    %5 = arith.addf %2, %4 : vector<32x256xf32>
    %6 = vector.extract_strided_slice %5 {offsets = [0, 0], sizes = [32, 128], strides = [1, 1]} : vector<32x256xf32> to vector<32x128xf32>
    %cst_5 = arith.constant 0.000000e+00 : f32
    %7 = vector.broadcast %cst_5 : f32 to vector<32x128xf32>
    %8 = arith.maximumf %6, %7 : vector<32x128xf32>
    %c0_6 = arith.constant 0 : index
    %c0_7 = arith.constant 0 : index
    %9 = vector.load %arg4[%c0_6, %c0_7] : memref<128x128xf32, #tpu.memory_space<vmem>>, vector<128x128xf32>
    %cst_8 = arith.constant dense<0.000000e+00> : vector<32x128xf32>
    %10 = tpu.matmul %8, %9, %cst_8 {dimension_numbers = #tpu.dot_dimension_numbers<[1], [0], [0], [1], [0, 0, 1, 1], [], []>, precision = #tpu.contract_precision<fp32>} : vector<32x128xf32>, vector<128x128xf32>, vector<32x128xf32> -> vector<32x128xf32>
    %c0_9 = arith.constant 0 : index
    %c0_10 = arith.constant 0 : index
    %11 = vector.load %arg5[%c0_9, %c0_10] : memref<1x128xf32, #tpu.memory_space<vmem>>, vector<1x128xf32>
    %12 = vector.broadcast %11 : vector<1x128xf32> to vector<32x128xf32>
    %13 = arith.addf %10, %12 : vector<32x128xf32>
    %14 = arith.negf %13 : vector<32x128xf32>
    %15 = math.exp %14 : vector<32x128xf32>
    %cst_11 = arith.constant 1.000000e+00 : f32
    %16 = vector.broadcast %cst_11 : f32 to vector<32x128xf32>
    %17 = arith.addf %16, %15 : vector<32x128xf32>
    %18 = arith.divf %16, %17 : vector<32x128xf32>
    %19 = vector.extract_strided_slice %18 {offsets = [0, 0], sizes = [32, 2], strides = [1, 1]} : vector<32x128xf32> to vector<32x2xf32>
    %c0_12 = arith.constant 0 : index
    %c0_13 = arith.constant 0 : index
    %20 = vector.load %arg6[%c0_12, %c0_13] : memref<32x8xf32, #tpu.memory_space<vmem>>, vector<32x2xf32>
    tpu.vector_store %arg6[%c0_12, %c0_13], %19 {strides = array<i32>} : memref<32x8xf32, #tpu.memory_space<vmem>>, vector<32x2xf32>,
    %21 = vector.extract_strided_slice %5 {offsets = [0, 128], sizes = [32, 128], strides = [1, 1]} : vector<32x256xf32> to vector<32x128xf32>
    %cst_14 = arith.constant dense<0xFF800000> : vector<32xf32>
    %22 = vector.multi_reduction <maximumf>, %21, %cst_14 [1] : vector<32x128xf32> to vector<32xf32>
    %23 = vector.shape_cast %22 : vector<32xf32> to vector<32x1xf32>
    %24 = vector.broadcast %23 : vector<32x1xf32> to vector<32x128xf32>
    %25 = arith.subf %21, %24 : vector<32x128xf32>
    %26 = math.exp %25 : vector<32x128xf32>
    %cst_15 = arith.constant dense<0.000000e+00> : vector<32xf32>
    %27 = vector.multi_reduction <add>, %26, %cst_15 [1] : vector<32x128xf32> to vector<32xf32>
    %28 = vector.shape_cast %27 : vector<32xf32> to vector<32x1xf32>
    %29 = vector.broadcast %28 : vector<32x1xf32> to vector<32x128xf32>
    %30 = arith.divf %26, %29 : vector<32x128xf32>
    %31 = arith.mulf %30, %18 : vector<32x128xf32>
    %cst_16 = arith.constant dense<0.000000e+00> : vector<32xf32>
    %32 = vector.multi_reduction <add>, %31, %cst_16 [1] : vector<32x128xf32> to vector<32xf32>
    %33 = vector.shape_cast %32 : vector<32xf32> to vector<32x1xf32>
    %34 = vector.extract_strided_slice %30 {offsets = [0, 0], sizes = [32, 2], strides = [1, 1]} : vector<32x128xf32> to vector<32x2xf32>
    %c0_17 = arith.constant 0 : index
    %c2 = arith.constant 2 : index
    %35 = vector.load %arg6[%c0_17, %c2] : memref<32x8xf32, #tpu.memory_space<vmem>>, vector<32x2xf32>
    tpu.vector_store %arg6[%c0_17, %c2], %34 {strides = array<i32>} : memref<32x8xf32, #tpu.memory_space<vmem>>, vector<32x2xf32>,
    %c0_18 = arith.constant 0 : index
    %c4 = arith.constant 4 : index
    %36 = vector.load %arg6[%c0_18, %c4] : memref<32x8xf32, #tpu.memory_space<vmem>>, vector<32x1xf32>
    tpu.vector_store %arg6[%c0_18, %c4], %33 {strides = array<i32>} : memref<32x8xf32, #tpu.memory_space<vmem>>, vector<32x1xf32>,
    return
  }
  func.func @transform_0(%arg0: i32) -> (i32, i32) {
    %c0_i32 = arith.constant 0 : i32
    %c0_i32_0 = arith.constant 0 : i32
    return %arg0, %c0_i32 : i32, i32
  }
  func.func @transform_1(%arg0: i32) -> (i32, i32) {
    %c0_i32 = arith.constant 0 : i32
    %c0_i32_0 = arith.constant 0 : i32
    %c0_i32_1 = arith.constant 0 : i32
    return %c0_i32, %c0_i32_0 : i32, i32
  }
  func.func @transform_2(%arg0: i32) -> (i32, i32) {
    %c0_i32 = arith.constant 0 : i32
    %c0_i32_0 = arith.constant 0 : i32
    %c0_i32_1 = arith.constant 0 : i32
    return %c0_i32, %c0_i32_0 : i32, i32
  }
  func.func @transform_3(%arg0: i32) -> (i32, i32) {
    %c0_i32 = arith.constant 0 : i32
    %c0_i32_0 = arith.constant 0 : i32
    %c0_i32_1 = arith.constant 0 : i32
    return %c0_i32, %c0_i32_0 : i32, i32
  }
  func.func @transform_4(%arg0: i32) -> (i32, i32) {
    %c0_i32 = arith.constant 0 : i32
    %c0_i32_0 = arith.constant 0 : i32
    %c0_i32_1 = arith.constant 0 : i32
    return %c0_i32, %c0_i32_0 : i32, i32
  }
  func.func @transform_5(%arg0: i32) -> (i32, i32) {
    %c0_i32 = arith.constant 0 : i32
    %c0_i32_0 = arith.constant 0 : i32
    return %arg0, %c0_i32 : i32, i32
  }
}

</mosaic_0001>

<bundles_post_ra>
// kernel: fused_handler_forward.1
= control target key start
LH: loop header
LB: loop body
LE: loop exit
PB: predicated region body
PF: predicated region fallthrough
CT: control target
= control target key end

     0   :  { %10 = vsyncpa [#allocation3], 0  ;;  %s3134_s0 = inlined_call_operand.hbm [shape: f32[32,32], index: 0, kind: input, shape index: {}]   ;;  %s3135_s1 = inlined_call_operand.hbm [shape: f32[32,256], index: 1, kind: input, shape index: {}]   ;;  %s3136_s2 = inlined_call_operand.vmem [shape: f32[1,256], index: 2, kind: input, shape index: {}]   ;;  %s3137_s3 = inlined_call_operand.hbm [shape: f32[128,128], index: 3, kind: input, shape index: {}]   ;;  %s3138_s4 = inlined_call_operand.vmem [shape: f32[1,128], index: 4, kind: input, shape index: {}]   ;;  %s3139_s5 = inlined_call_operand.vmem [shape: f32[32,8], index: 5, kind: output, shape index: {}]  }
   0x1   :  { %11 = vsyncpa [#allocation5], 0  ;;  %s2470_s18 = smov [#allocation4]   ;;  %s2400_s22 = scalar_lea.hbm %s3135_s1, 1024 }
   0x2   :  { %s29_s19 = sshll.u32 %s2470_s18, 4  ;;  %p2401_p0 = scmp.ne.s32.totalorder %s3135_s1, %s2400_s22  ;;  %s30_s19 = int_to_ptr.vmem [resolvable:$true] %s29_s19 }
   0x3   :  { %p2404_p1 = scmp.lt.u32.totalorder %s2400_s22, %s3135_s1 }
   0x5   :  { %p2406_p2 = pnand %p2404_p1, %p2401_p0 }
   0x7   :  { %2409 = shalt.err (!%p2406_p2)
}
   0x8   :  { %s2410_s27 = scalar_lea.vmem %s30_s19, 1024  ;;  %p2415_p4 = scmp.lt.s32.totalorder %s30_s19, %s30_s19 }
   0x9   :  { %p2411_p3 = scmp.ne.s32.totalorder %s30_s19, %s2410_s27  ;;  %p2416_p5 = scmp.lt.s32.totalorder %s2410_s27, %s2410_s27 }
   0xb   :  { %p2417_p6 = por %p2416_p5, %p2415_p4 }
   0xd   :  { %p2418_p7 = pnand %p2417_p6, %p2411_p3 }
   0xf   :  { %2421 = shalt.err (!%p2418_p7)
}
  0x10   :  { %s2471_s28 = smov 256   ;;  %s2472_s29 = smov 16  }
  0x11   :  { %35 = dma.hbm_to_vmem [thread:$0]  %s3135_s1, 1024, %s30_s19, [#allocation5], %s2471_s28, %s2471_s28, %s2472_s29  }
  0x12   :  { %s2473_s7 = smov [#allocation2]   ;;  %s2422_s11 = scalar_lea.hbm %s3134_s0, 512 }
  0x13   :  { %s17_s8 = sshll.u32 %s2473_s7, 4  ;;  %p2423_p8 = scmp.ne.s32.totalorder %s3134_s0, %s2422_s11  ;;  %s18_s8 = int_to_ptr.vmem [resolvable:$true] %s17_s8 }
  0x14   :  { %p2426_p9 = scmp.lt.u32.totalorder %s2422_s11, %s3134_s0 }
  0x16   :  { %p2428_p10 = pnand %p2426_p9, %p2423_p8 }
  0x18   :  { %2431 = shalt.err (!%p2428_p10)
}
  0x19   :  { %s2432_s16 = scalar_lea.vmem %s18_s8, 512  ;;  %p2437_p12 = scmp.lt.s32.totalorder %s18_s8, %s18_s8 }
  0x1a   :  { %p2433_p11 = scmp.ne.s32.totalorder %s18_s8, %s2432_s16  ;;  %p2438_p13 = scmp.lt.s32.totalorder %s2432_s16, %s2432_s16 }
  0x1c   :  { %p2439_p0 = por %p2438_p13, %p2437_p12 }
  0x1e   :  { %p2440_p1 = pnand %p2439_p0, %p2433_p11 }
  0x20   :  { %2443 = shalt.err (!%p2440_p1)
}
  0x21   :  { %s2474_s1 = smov 128   ;;  %s2475_s17 = smov 8  }
  0x22   :  { %23 = dma.hbm_to_vmem [thread:$0]  %s3134_s0, 512, %s18_s8, [#allocation3], %s2474_s1, %s2474_s1, %s2475_s17  }
  0x23   :  { %s2476_s20 = smov [#allocation6]   ;;  %s2444_s24 = scalar_lea.hbm %s3137_s3, 2048 }
  0x24   :  { %s43_s21 = sshll.u32 %s2476_s20, 4  ;;  %p2445_p2 = scmp.ne.s32.totalorder %s3137_s3, %s2444_s24  ;;  %s44_s21 = int_to_ptr.vmem [resolvable:$true] %s43_s21 }
  0x25   :  { %p2448_p3 = scmp.lt.u32.totalorder %s2444_s24, %s3137_s3 }
  0x27   :  { %p2450_p4 = pnand %p2448_p3, %p2445_p2 }
  0x29   :  { %2453 = shalt.err (!%p2450_p4)
}
  0x2a   :  { %s2454_s29 = scalar_lea.vmem %s44_s21, 2048  ;;  %p2459_p6 = scmp.lt.s32.totalorder %s44_s21, %s44_s21 }
  0x2b   :  { %p2455_p5 = scmp.ne.s32.totalorder %s44_s21, %s2454_s29  ;;  %p2460_p7 = scmp.lt.s32.totalorder %s2454_s29, %s2454_s29 }
  0x2d   :  { %p2461_p8 = por %p2460_p7, %p2459_p6 }
  0x2f   :  { %p2462_p9 = pnand %p2461_p8, %p2455_p5 }
  0x31   :  { %2465 = shalt.err (!%p2462_p9)
}
  0x32   :  { %49 = dma.hbm_to_vmem [thread:$0]  %s3137_s3, 2048, %s44_s21, [#allocation5], %s2474_s1, %s2474_s1, %s2475_s17  }
  0x33   :  { %2466 = dma.done.wait [#allocation3], 512  }
  0x34   :  { %2467 = vsyncadd [#allocation3], 4294966784 }
  0x35   :  { %2468 = dma.done.wait [#allocation5], 3072  }
  0x36   :  { %2469 = vsyncadd [#allocation5], 4294964224  ;;  %v2477_v0 = vmov 0.0   ;;  %v2547_v1 = vld [vmem:[#allocation4 + $0x8] sm:$0xff]  ;;  %v2549_v2 = vld [vmem:[#allocation4 + $0x18] sm:$0xff]  ;;  %vm85_vm0 = vcmask 261120  }
  0x37   :  { %319 = vmatprep.mubr.f32.mxu0 %v2477_v0  ;;  %170 = vmatprep.mubr.f32.mxu1 %v2477_v0  ;;  %v2551_v3 = vld [vmem:[#allocation4] sm:$0xff]  ;;  %v98_v4 = vand.u32 4294901760, %v2547_v1  ;;  %v102_v5 = vand.u32 4294901760, %v2549_v2  ;;  %v67_v6 = vld [vmem:[#allocation4 + $0x10] sm:$0xff]  ;;  %v2556_v8 = vld [vmem:[#allocation4 + $0x28] sm:$0xff]  ;;  %vm1609_vm1 = vcmask 15360  }
  0x38   :  { %v100_v7 = vand.u32 4294901760, %v2551_v3  ;;  %v2558_v9 = vld [vmem:[#allocation4 + $0x38] sm:$0xff]  ;;  %v104_v10 = vand.u32 4294901760, %v67_v6  ;;  %v106_v11 = vand.u32 4294901760, %v2556_v8  ;;  %v2562_v13 = vld [vmem:[#allocation4 + $0x20] sm:$0xff]  ;;  %v2564_v14 = vld [vmem:[#allocation4 + $0x30] sm:$0xff] }
  0x39   :  { %v110_v12 = vand.u32 4294901760, %v2558_v9  ;;  %v2567_v15 = vsub.f32 %v2547_v1, %v98_v4  ;;  %v2570_v16 = vsub.f32 %v2549_v2, %v102_v5  ;;  %v108_v18 = vand.u32 4294901760, %v2562_v13  ;;  %v61_v39 = vld [vmem:[#allocation2] sm:$0xff]  ;;  %v62_v48 = vld [vmem:[#allocation2 + $0x8] sm:$0xff]  ;;  %v63_v58 = vld [vmem:[#allocation2 + $0x10] sm:$0xff]  ;;  %s2478_s15 = smov 2  }
  0x3a   :  { %v2573_v17 = vsub.f32 %v2551_v3, %v100_v7  ;;  %v2576_v19 = vsub.f32 %v67_v6, %v104_v10  ;;  %v2579_v20 = vsub.f32 %v2556_v8, %v106_v11  ;;  %v112_v22 = vand.u32 4294901760, %v2564_v14  ;;  %v2642_v1 = vld [vmem:[#allocation6] sm:$0xff]  ;;  %v2644_v2 = vld [vmem:[#allocation6 + $0x8] sm:$0xff] }
  0x3b   :  { %v2582_v21 = vsub.f32 %v2558_v9, %v110_v12  ;;  %v217_v23 = vand.u32 4294901760, %v2567_v15  ;;  %v229_v24 = vand.u32 4294901760, %v2570_v16  ;;  %v2591_v26 = vsub.f32 %v2562_v13, %v108_v18  ;;  %v2651_v9 = vld [vmem:[#allocation6 + $0x10] sm:$0xff] }
  0x3c   :  { %v223_v25 = vand.u32 4294901760, %v2573_v17  ;;  %v235_v27 = vand.u32 4294901760, %v2576_v19  ;;  %v241_v28 = vand.u32 4294901760, %v2579_v20  ;;  %v2599_v30 = vsub.f32 %v2564_v14, %v112_v22 }
  0x3d   :  { %v253_v29 = vand.u32 4294901760, %v2582_v21  ;;  %v218_v31 = vsub.f32 %v2567_v15, %v217_v23  ;;  %v230_v32 = vsub.f32 %v2570_v16, %v229_v24  ;;  %v247_v34 = vand.u32 4294901760, %v2591_v26 }
  0x3e   :  { %v224_v33 = vsub.f32 %v2573_v17, %v223_v25  ;;  %v236_v35 = vsub.f32 %v2576_v19, %v235_v27  ;;  %v242_v36 = vsub.f32 %v2579_v20, %v241_v28  ;;  %v259_v38 = vand.u32 4294901760, %v2599_v30 }
  0x3f   :  { %v254_v37 = vsub.f32 %v2582_v21, %v253_v29  ;;  %v219_v40 = vand.u32 4294901760, %v218_v31  ;;  %v231_v41 = vand.u32 4294901760, %v230_v32  ;;  %v248_v43 = vsub.f32 %v2591_v26, %v247_v34  ;;  %v2667_v32 = vld [vmem:[#allocation6 + $0x18] sm:$0xff] }
  0x40   :  { %v225_v42 = vand.u32 4294901760, %v224_v33  ;;  %v237_v44 = vand.u32 4294901760, %v236_v35  ;;  %v243_v45 = vand.u32 4294901760, %v242_v36  ;;  %v260_v47 = vsub.f32 %v2599_v30, %v259_v38 }
  0x41   :  { %v255_v46 = vand.u32 4294901760, %v254_v37  ;;  %v2055_v49 = vpack.c.bf16 %v231_v41, %v219_v40  ;;  %v249_v50 = vand.u32 4294901760, %v248_v43  ;;  %v87_v51 = vsel %vm85_vm0, %v61_v39, 0  ;;  %v2675_v39 = vld [vmem:[#allocation6 + $0x20] sm:$0xff]  ;;  %v2677_v40 = vld [vmem:[#allocation6 + $0x28] sm:$0xff] }
  0x42   :  { %v2057_v52 = vpack.c.bf16 %v237_v44, %v225_v42  ;;  %v261_v54 = vand.u32 4294901760, %v260_v47  ;;  %v2628_v55 = vand.u32 4294901760, %v87_v51  ;;  %v90_v56 = vsel %vm85_vm0, %v62_v48, 0 }
  0x43   :  { %v2059_v53 = vpack.c.bf16 %v255_v46, %v243_v45  ;;  %2056 = vmatprep.subr.bf16.mxu0 %v2055_v49  ;;  %v2063_v60 = vpack.c.bf16 %v2570_v16, %v2567_v15  ;;  %v2636_v61 = vpack.c.bf16 %v102_v5, %v98_v4  ;;  %v2638_v62 = vand.u32 4294901760, %v90_v56  ;;  %v64_v5 = vld [vmem:[#allocation2 + $0x18] sm:$0xff]  ;;  %v2697_v45 = vld [vmem:[#allocation6 + $0x30] sm:$0xff] }
  0x44   :  { %2058 = vmatpush1.bf16.msra.mxu0 %v2057_v52  ;;  %v2061_v57 = vpack.c.bf16 %v261_v54, %v249_v50  ;;  %v2632_v59 = vsub.f32 %v87_v51, %v2628_v55  ;;  %v2640_v63 = vpack.c.bf16 %v104_v10, %v100_v7  ;;  %v93_v3 = vsel %vm85_vm0, %v63_v58, 0  ;;  %v2707_v46 = vld [vmem:[#allocation6 + $0x38] sm:$0xff] }
  0x45   :  { %2060 = vmatprep.subr.bf16.mxu0 %v2059_v53  ;;  %v2647_v6 = vpack.c.bf16 %v110_v12, %v106_v11  ;;  %2048 = vmatprep.subr.bf16.mxu1 %v2636_v61  ;;  %v2065_v4 = vpack.c.bf16 %v2576_v19, %v2573_v17  ;;  %v2656_v7 = vsub.f32 %v90_v56, %v2638_v62  ;;  %v816_v12 = vand.u32 4294901760, %v2642_v1 }
  0x46   :  { %v173_v8 = vand.u32 4294901760, %v2632_v59  ;;  %2050 = vmatpush1.bf16.msra.mxu1 %v2640_v63  ;;  %v2067_v10 = vpack.c.bf16 %v2582_v21, %v2579_v20  ;;  %v819_v31 = vand.u32 4294901760, %v2644_v2  ;;  %v2669_v33 = vand.u32 4294901760, %v93_v3 }
  0x47   :  { %2052 = vmatprep.subr.bf16.mxu1 %v2647_v6  ;;  %v2069_v35 = vpack.c.bf16 %v2599_v30, %v2591_v26  ;;  %v184_v36 = vand.u32 4294901760, %v2656_v7  ;;  %v822_v37 = vand.u32 4294901760, %v2651_v9  ;;  %v96_v41 = vsel %vm85_vm0, %v64_v5, 0  ;;  %v2748_v5 = vld [vmem:[#allocation6 + $0x48] sm:$0xff]  ;;  %v802_v30 = vld [vmem:[#allocation6 + $0x50] sm:$0xff] }
  0x48   :  { %2062 = vmatpush1.bf16.msra.mxu0 %v2061_v57  ;;  %v174_v11 = vsub.f32 %v2632_v59, %v173_v8  ;;  %v2685_v42 = vpack.c.bf16 %v112_v22, %v108_v18  ;;  %v2690_v43 = vsub.f32 %v2642_v1, %v816_v12  ;;  %v2695_v44 = vsub.f32 %v2644_v2, %v819_v31 }
  0x49   :  { %2064 = vmatprep.subr.bf16.mxu0 %v2063_v60  ;;  %v2701_v13 = vsub.f32 %v93_v3, %v2669_v33  ;;  %v185_v18 = vsub.f32 %v2656_v7, %v184_v36  ;;  %v3144_v22 = vand.u32 4294901760, %v2667_v32  ;;  %v2715_v48 = vsub.f32 %v2651_v9, %v822_v37  ;;  %v806_v9 = vld [vmem:[#allocation6 + $0x70] sm:$0xff] }
  0x4a   :  { %v175_v14 = vand.u32 4294901760, %v174_v11  ;;  %2054 = vmatpush1.bf16.msra.mxu1 %v2685_v42  ;;  %v2159_v47 = vpack.c.bf16 %v2695_v44, %v2690_v43  ;;  %v3142_v49 = vand.u32 4294901760, %v2675_v39  ;;  %v3140_v50 = vand.u32 4294901760, %v2677_v40 }
  0x4b   :  { %321 = vmatmul.mubr.f32.vlgmr.msra.gmra.mrb[0].mxu0 %v2628_v55  ;;  %v2719_v51 = vand.u32 4294901760, %v96_v41  ;;  %v2724_v52 = vsub.f32 %v2667_v32, %v3144_v22  ;;  %v3141_v53 = vand.u32 4294901760, %v2697_v45  ;;  %v195_v54 = vand.u32 4294901760, %v2701_v13 }
  0x4c   :  { %2066 = vmatpush1.bf16.msra.mxu0 %v2065_v4  ;;  %326 = vmatprep.mubr.f32.mxu0 %v2477_v0  ;;  %v2732_v56 = vsub.f32 %v2675_v39, %v3142_v49  ;;  %v2737_v57 = vsub.f32 %v2677_v40, %v3140_v50  ;;  %v3143_v58 = vand.u32 4294901760, %v2707_v46  ;;  %v2746_v4 = vld [vmem:[#allocation6 + $0x40] sm:$0xff]  ;;  %v2081_v15 = vpack.c.bf16 %v235_v27, %v223_v25 }
  0x4d   :  { %2068 = vmatprep.subr.bf16.mxu0 %v2067_v10  ;;  %2160 = vmatprep.subr.bf16.mxu1 %v2159_v47  ;;  %v2742_v60 = vsub.f32 %v96_v41, %v2719_v51  ;;  %v2163_v3 = vpack.c.bf16 %v2724_v52, %v2715_v48  ;;  %v186_v10 = vand.u32 4294901760, %v185_v18  ;;  %v196_v11 = vsub.f32 %v2701_v13, %v195_v54 }
  0x4e   :  { %176 = vmatmul.mubr.f32.vlgmr.msra.gmra.mrb[0].mxu1 %v175_v14  ;;  %v2759_v41 = vsub.f32 %v2697_v45, %v3141_v53  ;;  %v2167_v14 = vpack.c.bf16 %v2737_v57, %v2732_v56  ;;  %v2767_v18 = vsub.f32 %v2707_v46, %v3143_v58  ;;  %v840_v50 = vand.u32 4294901760, %v2746_v4 }
  0x4f   :  { %328 = vmatmul.mubr.f32.gmra.mrb[2].mxu0 %v2638_v62  ;;  %181 = vmatprep.mubr.f32.mxu1 %v2477_v0  ;;  %v197_v53 = vand.u32 4294901760, %v196_v11  ;;  %v2083_v16 = vpack.c.bf16 %v253_v29, %v241_v28  ;;  %v2837_v17 = vpack.c.bf16 %v819_v31, %v816_v12  ;;  %v3145_v19 = vand.u32 4294901760, %v2667_v32 }
  0x50   :  { %333 = vmatprep.mubr.f32.mxu0 %v2477_v0  ;;  %2070 = vmatpush1.bf16.msra.mxu0 %v2069_v35  ;;  %v206_v35 = vand.u32 4294901760, %v2742_v60  ;;  %v2171_v58 = vpack.c.bf16 %v2767_v18, %v2759_v41  ;;  %v2780_v22 = vsub.f32 %v2746_v4, %v840_v50  ;;  %v3146_v21 = vand.u32 4294901760, %v2675_v39 }
  0x51   :  { %2072 = vmatprep.subr.bf16.mxu0 %v2636_v61  ;;  %2162 = vmatpush3.bf16.msra.mxu1 %v2159_v47  ;;  %v843_v47 = vand.u32 4294901760, %v2748_v5  ;;  %v2851_v20 = vpack.c.bf16 %v3145_v19, %v822_v37  ;;  %v3148_v26 = vand.u32 4294901760, %v2697_v45  ;;  %v3149_v27 = vand.u32 4294901760, %v2707_v46 }
  0x52   :  { %2164 = vmatprep.subr.bf16.mxu1 %v2163_v3  ;;  %187 = vmatmul.mubr.f32.gmra.mrb[2].mxu1 %v186_v10  ;;  %v207_v49 = vsub.f32 %v2742_v60, %v206_v35  ;;  %v858_v31 = vand.u32 4294901760, %v806_v9  ;;  %v946_v45 = vand.u32 4294901760, %v2695_v44  ;;  %vm1678_vm2 = vcmask 31760  }
  0x53   :  { %335 = vmatmul.mubr.f32.gmra.mrb[4].mxu0 %v2669_v33  ;;  %192 = vmatprep.mubr.f32.mxu1 %v2477_v0  ;;  %v2785_v10 = vsub.f32 %v2748_v5, %v843_v47  ;;  %v2870_v28 = vpack.c.bf16 %v3149_v27, %v3148_v26  ;;  %v2880_v29 = vpack.c.bf16 %v843_v47, %v840_v50  ;;  %vm1683_vm3 = vcmask 39968  }
  0x54   :  { %340 = vmatprep.mubr.f32.mxu0 %v2477_v0  ;;  %v947_v50 = vsub.f32 %v2695_v44, %v946_v45 }
  0x55   :  { %2166 = vmatpush3.bf16.msra.mxu1 %v2163_v3  ;;  %v208_v3 = vand.u32 4294901760, %v207_v49  ;;  %v2175_v11 = vpack.c.bf16 %v2785_v10, %v2780_v22  ;;  %v2079_v49 = vpack.c.bf16 %v229_v24, %v217_v23  ;;  %v2085_v23 = vpack.c.bf16 %v259_v38, %v247_v34 }
  0x56   :  { %2168 = vmatprep.subr.bf16.mxu1 %v2167_v14  ;;  %198 = vmatmul.mubr.f32.gmra.mrb[4].mxu1 %v197_v53  ;;  %v3147_v24 = vand.u32 4294901760, %v2677_v40  ;;  %v846_v34 = vand.u32 4294901760, %v802_v30  ;;  %v948_v53 = vand.u32 4294901760, %v947_v50 }
  0x57   :  { %342 = vmatmul.mubr.f32.gmra.mrb[6].mxu0 %v2719_v51  ;;  %203 = vmatprep.mubr.f32.mxu1 %v2477_v0 }
  0x58   :  { %428 = vmatprep.mubr.f32.mxu0 %v2477_v0  ;;  %v2860_v25 = vpack.c.bf16 %v3147_v24, %v3146_v21 }
  0x59   :  { %2170 = vmatpush3.bf16.msra.mxu1 %v2167_v14 }
  0x5a   :  { %2172 = vmatprep.subr.bf16.mxu1 %v2171_v58  ;;  %209 = vmatmul.mubr.f32.gmra.mrb[6].mxu1 %v208_v3 }
  0x5b   :  { %431 = vmatmul.mubr.f32.vlgmr.msra.gmra.mrb[0].mxu0 %v2632_v59 }
  0x5c   :  { %2074 = vmatpush1.bf16.msra.mxu0 %v2640_v63  ;;  %436 = vmatprep.mubr.f32.mxu0 %v2477_v0 }
  0x5d   :  { %2076 = vmatprep.subr.bf16.mxu0 %v2647_v6  ;;  %2174 = vmatpush3.bf16.msra.mxu1 %v2171_v58 }
  0x5e   :  { %2176 = vmatprep.subr.bf16.mxu1 %v2175_v11 }
  0x5f   :  { %439 = vmatmul.mubr.f32.gmra.mrb[2].mxu0 %v2656_v7  ;;  %v807_v7 = vld [vmem:[#allocation6 + $0x78] sm:$0xff] }
  0x60   :  { %444 = vmatprep.mubr.f32.mxu0 %v2477_v0  ;;  %2078 = vmatpush1.bf16.msra.mxu0 %v2685_v42  ;;  %v861_v32 = vand.u32 4294901760, %v807_v7 }
  0x61   :  { %2080 = vmatprep.subr.bf16.mxu0 %v2079_v49  ;;  %2178 = vmatpush3.bf16.msra.mxu1 %v2175_v11 }
  0x62   :  { %v1043_v37 = vsub.f32 %v807_v7, %v861_v32 }
  0x63   :  { %447 = vmatmul.mubr.f32.gmra.mrb[4].mxu0 %v2701_v13  ;;  %v2904_v13 = vpack.c.bf16 %v861_v32, %v858_v31 }
  0x64   :  { %452 = vmatprep.mubr.f32.mxu0 %v2477_v0 }
  0x67   :  { %455 = vmatmul.mubr.f32.gmra.mrb[6].mxu0 %v2742_v60 }
  0x68   :  { %533 = vmatprep.mubr.f32.mxu0 %v2477_v0 }
  0x6b   :  { %537 = vmatmul.mubr.f32.vlgmr.msra.gmra.mrb[0].mxu0 %v173_v8 }
  0x6c   :  { %2082 = vmatpush1.bf16.msra.mxu0 %v2081_v15  ;;  %542 = vmatprep.mubr.f32.mxu0 %v2477_v0 }
  0x6d   :  { %2084 = vmatprep.subr.bf16.mxu0 %v2083_v16 }
  0x6f   :  { %546 = vmatmul.mubr.f32.gmra.mrb[2].mxu0 %v184_v36  ;;  %v1036_v36 = vsub.f32 %v806_v9, %v858_v31  ;;  %v75_v9 = vlaneseq  ;;  %v73_v31 = vld [vmem:[%s3136_s2] sm:$0x3] }
  0x70   :  { %551 = vmatprep.mubr.f32.mxu0 %v2477_v0  ;;  %2086 = vmatpush1.bf16.msra.mxu0 %v2085_v23  ;;  %v1044_v23 = vand.u32 4294901760, %v1043_v37 }
  0x71   :  { %2088 = vmatprep.subr.bf16.mxu0 %v2636_v61  ;;  %v804_v61 = vld [vmem:[#allocation6 + $0x60] sm:$0xff]  ;;  %v2187_v39 = vpack.c.bf16 %v1043_v37, %v1036_v36  ;;  %v1037_v16 = vand.u32 4294901760, %v1036_v36  ;;  %v76_v7 = vshrl.u32 %v75_v9, 7 }
  0x72   :  { %v852_v1 = vand.u32 4294901760, %v804_v61  ;;  %v1045_v24 = vsub.f32 %v1043_v37, %v1044_v23 }
  0x73   :  { %555 = vmatmul.mubr.f32.gmra.mrb[4].mxu0 %v195_v54  ;;  %v1038_v21 = vsub.f32 %v1036_v36, %v1037_v16  ;;  %v81_v32 = vsub.s32 1, %v76_v7 }
  0x74   :  { %560 = vmatprep.mubr.f32.mxu0 %v2477_v0 }
  0x75   :  { %v1039_v27 = vand.u32 4294901760, %v1038_v21  ;;  %v82_v37 = vrot.slane %v73_v31, %v81_v32 }
  0x77   :  { %564 = vmatmul.mubr.f32.gmra.mrb[6].mxu0 %v206_v35 }
  0x78   :  { %658 = vmatprep.mubr.f32.mxu0 %v2477_v0 }
  0x7b   :  { %660 = vmatmul.mubr.f32.vlgmr.msra.gmra.mrb[0].mxu0 %v2628_v55 }
  0x7c   :  { %2090 = vmatpush1.bf16.msra.mxu0 %v2640_v63  ;;  %665 = vmatprep.mubr.f32.mxu0 %v2477_v0 }
  0x7d   :  { %2092 = vmatprep.subr.bf16.mxu0 %v2647_v6  ;;  %v1022_v6 = vsub.f32 %v804_v61, %v852_v1 }
  0x7f   :  { %667 = vmatmul.mubr.f32.gmra.mrb[2].mxu0 %v2638_v62  ;;  %v1023_v35 = vand.u32 4294901760, %v1022_v6 }
  0x80   :  { %672 = vmatprep.mubr.f32.mxu0 %v2477_v0  ;;  %2094 = vmatpush1.bf16.msra.mxu0 %v2685_v42  ;;  %v939_v42 = vand.u32 4294901760, %v2690_v43 }
  0x81   :  { %2096 = vmatprep.subr.bf16.mxu0 %v2837_v17  ;;  %v1024_v3 = vsub.f32 %v1022_v6, %v1023_v35 }
  0x82   :  { %v940_v46 = vsub.f32 %v2690_v43, %v939_v42  ;;  %v2921_v26 = vpack.c.bf16 %v946_v45, %v939_v42 }
  0x83   :  { %674 = vmatmul.mubr.f32.gmra.mrb[4].mxu0 %v2669_v33  ;;  %v1025_v49 = vand.u32 4294901760, %v1024_v3 }
  0x84   :  { %679 = vmatprep.mubr.f32.mxu0 %v2477_v0 }
  0x87   :  { %681 = vmatmul.mubr.f32.gmra.mrb[6].mxu0 %v2719_v51 }
  0x88   :  { %759 = vmatprep.mubr.f32.mxu0 %v2477_v0 }
  0x8b   :  { %761 = vmatmul.mubr.f32.vlgmr.msra.gmra.mrb[0].mxu0 %v2628_v55  ;;  %v2887_v55 = vsub.f32 %v802_v30, %v846_v34  ;;  %v1046_v30 = vand.u32 4294901760, %v1045_v24  ;;  %v967_v24 = vand.u32 4294901760, %v2732_v56 }
  0x8c   :  { %766 = vmatprep.mubr.f32.mxu0 %v2477_v0  ;;  %2098 = vmatpush3.bf16.msra.mxu0 %v2837_v17 }
  0x8d   :  { %2100 = vmatprep.subr.bf16.mxu0 %v2851_v20  ;;  %v1009_v58 = vand.u32 4294901760, %v2887_v55 }
  0x8f   :  { %768 = vmatmul.mubr.f32.gmra.mrb[2].mxu0 %v2638_v62  ;;  %v805_v62 = vld [vmem:[#allocation6 + $0x68] sm:$0xff]  ;;  %v1010_v4 = vsub.f32 %v2887_v55, %v1009_v58 }
  0x90   :  { %773 = vmatprep.mubr.f32.mxu0 %v2477_v0  ;;  %2102 = vmatpush3.bf16.msra.mxu0 %v2851_v20  ;;  %v855_v2 = vand.u32 4294901760, %v805_v62 }
  0x91   :  { %2104 = vmatprep.subr.bf16.mxu0 %v2860_v25  ;;  %v1011_v5 = vand.u32 4294901760, %v1010_v4  ;;  %v960_v4 = vand.u32 4294901760, %v2724_v52 }
  0x92   :  { %v1029_v8 = vsub.f32 %v805_v62, %v855_v2  ;;  %v2897_v40 = vpack.c.bf16 %v855_v2, %v852_v1 }
  0x93   :  { %775 = vmatmul.mubr.f32.gmra.mrb[4].mxu0 %v2669_v33 }
  0x94   :  { %780 = vmatprep.mubr.f32.mxu0 %v2477_v0  ;;  %2106 = vmatpush3.bf16.msra.mxu0 %v2860_v25  ;;  %v803_v0 = vld [vmem:[#allocation6 + $0x58] sm:$0xff]  ;;  %v2183_v12 = vpack.c.bf16 %v1029_v8, %v1022_v6  ;;  %v1030_v14 = vand.u32 4294901760, %v1029_v8 }
  0x95   :  { %2108 = vmatprep.subr.bf16.mxu0 %v2870_v28  ;;  %v849_v38 = vand.u32 4294901760, %v803_v0 }
  0x96   :  { %v1031_v11 = vsub.f32 %v1029_v8, %v1030_v14 }
  0x97   :  { %782 = vmatmul.mubr.f32.gmra.mrb[6].mxu0 %v2719_v51  ;;  %v2889_v59 = vsub.f32 %v803_v0, %v849_v38  ;;  %v2893_v33 = vpack.c.bf16 %v849_v38, %v846_v34  ;;  %v941_v51 = vand.u32 4294901760, %v940_v46  ;;  %v2923_v0 = vpack.c.bf16 %v1046_v30, %v1039_v27 }
  0x98   :  { %2110 = vmatpush3.bf16.msra.mxu0 %v2870_v28  ;;  %v1032_v15 = vand.u32 4294901760, %v1031_v11  ;;  %v2927_v38 = vpack.c.bf16 %v1030_v14, %v1023_v35  ;;  %v974_v30 = vand.u32 4294901760, %v2737_v57 }
  0x99   :  { %2112 = vmatprep.subr.bf16.mxu0 %v2880_v29  ;;  %v2179_v63 = vpack.c.bf16 %v2889_v59, %v2887_v55  ;;  %v2910_v54 = vpack.c.bf16 %v948_v53, %v941_v51  ;;  %v1016_v60 = vand.u32 4294901760, %v2889_v59 }
  0x9a   :  { %v2919_v19 = vpack.c.bf16 %v1032_v15, %v1025_v49 }
  0x9b   :  { %2180 = vmatprep.subr.bf16.mxu1 %v2179_v63  ;;  %v1017_v43 = vsub.f32 %v2889_v59, %v1016_v60  ;;  %v2925_v34 = vpack.c.bf16 %v1016_v60, %v1009_v58  ;;  %v2929_v59 = vpack.c.bf16 %v1044_v23, %v1037_v16  ;;  %v953_v60 = vand.u32 4294901760, %v2715_v48 }
  0x9c   :  { %2114 = vmatpush3.bf16.msra.mxu0 %v2880_v29  ;;  %2182 = vmatpush3.bf16.msra.mxu1 %v2179_v63  ;;  %v961_v16 = vsub.f32 %v2724_v52, %v960_v4 }
  0x9d   :  { %2184 = vmatprep.subr.bf16.mxu1 %v2183_v12  ;;  %2116 = vmatprep.subr.bf16.mxu0 %v2893_v33  ;;  %v1018_v44 = vand.u32 4294901760, %v1017_v43  ;;  %v954_v15 = vsub.f32 %v2715_v48, %v953_v60 }
  0x9f   :  { %v2917_v47 = vpack.c.bf16 %v1018_v44, %v1011_v5 }
  0xa0   :  { %2186 = vmatpush3.bf16.msra.mxu1 %v2183_v12  ;;  %2118 = vmatpush3.bf16.msra.mxu0 %v2893_v33  ;;  %v77_v12 = vsub.s32 0, %v76_v7  ;;  %v955_v7 = vand.u32 4294901760, %v954_v15 }
  0xa1   :  { %2188 = vmatprep.subr.bf16.mxu1 %v2187_v39  ;;  %2120 = vmatprep.subr.bf16.mxu0 %v2897_v40 }
  0xa2   :  { %v78_v36 = vrot.slane %v73_v31, %v77_v12  ;;  %v962_v12 = vand.u32 4294901760, %v961_v16 }
  0xa4   :  { %2190 = vmatpush3.bf16.msra.mxu1 %v2187_v39  ;;  %2122 = vmatpush3.bf16.msra.mxu0 %v2897_v40 }
  0xa5   :  { %2192 = vmatprep.subr.bf16.mxu1 %v2837_v17  ;;  %2124 = vmatprep.subr.bf16.mxu0 %v2904_v13 }
  0xa8   :  { %2126 = vmatpush3.bf16.msra.mxu0 %v2904_v13 }
  0xa9   :  { %2128 = vmatprep.subr.bf16.mxu0 %v2910_v54 }
 0x121   :  { %v177_v55 = vpop.f32.mrb[0].mxu1 }
 0x122   :  { %v179_v61 = vpop.f32.mrb[1].mxu1  ;;  %v178_v39 = vadd.f32 %v177_v55, %v78_v36 }
 0x123   :  { %v180_v42 = vadd.f32 %v179_v61, %v82_v37 }
 0x125   :  { %v188_v62 = vpop.f32.mrb[2].mxu1 }
 0x126   :  { %v190_v63 = vpop.f32.mrb[3].mxu1  ;;  %v189_v51 = vadd.f32 %v188_v62, %v78_v36 }
 0x127   :  { %v191_v58 = vadd.f32 %v190_v63, %v82_v37 }
 0x129   :  { %v199_v1 = vpop.f32.mrb[4].mxu1 }
 0x12a   :  { %v201_v2 = vpop.f32.mrb[5].mxu1  ;;  %v200_v3 = vadd.f32 %v199_v1, %v78_v36 }
 0x12b   :  { %v202_v49 = vadd.f32 %v201_v2, %v82_v37 }
 0x12d   :  { %v210_v6 = vpop.f32.mrb[6].mxu1 }
 0x12e   :  { %v212_v8 = vpop.f32.mrb[7].mxu1  ;;  %v211_v63 = vadd.f32 %v210_v6, %v78_v36  ;;  %v975_v6 = vsub.f32 %v2737_v57, %v974_v30  ;;  %v988_v36 = vand.u32 4294901760, %v2767_v18 }
 0x12f   :  { %v213_v9 = vadd.f32 %v212_v8, %v82_v37  ;;  %v981_v8 = vand.u32 4294901760, %v2759_v41 }
 0x130   :  { %v976_v15 = vand.u32 4294901760, %v975_v6 }
 0x131   :  { %v982_v16 = vsub.f32 %v2759_v41, %v981_v8  ;;  %v2235_v48 = vpack.c.bf16 %v988_v36, %v981_v8 }
 0x15e   :  { %v762_v45 = vpop.f32.mrb[0].mxu0 }
 0x15f   :  { %v2288_v46 = vadd.f32 %v762_v45, %v178_v39  ;;  %v764_v50 = vpop.f32.mrb[1].mxu0 }
 0x160   :  { %v2934_v53 = vadd.f32 %v764_v50, %v180_v42  ;;  %v968_v42 = vsub.f32 %v2732_v56, %v967_v24 }
 0x161   :  { %v788_v43 = vmax.f32 %v2288_v46, 0.0 }
 0x162   :  { %v769_v5 = vpop.f32.mrb[2].mxu0  ;;  %1614 = vmax.xlane.f32.xlu0 %v2934_v53 }
 0x163   :  { %v2939_v44 = vand.u32 4294901760, %v788_v43  ;;  %v2292_v35 = vadd.f32 %v769_v5, %v189_v51  ;;  %v771_v14 = vpop.f32.mrb[3].mxu0  ;;  %v2131_v5 = vpack.c.bf16 %v962_v12, %v955_v7 }
 0x164   :  { %v2941_v11 = vadd.f32 %v771_v14, %v191_v58 }
 0x165   :  { %v2950_v23 = vsub.f32 %v788_v43, %v2939_v44  ;;  %v789_v21 = vmax.f32 %v2292_v35, 0.0 }
 0x166   :  { %v776_v27 = vpop.f32.mrb[4].mxu0  ;;  %1616 = vmax.xlane.f32.xlu0 %v2941_v11 }
 0x167   :  { %v2955_v55 = vand.u32 4294901760, %v789_v21  ;;  %v2296_v61 = vadd.f32 %v776_v27, %v200_v3  ;;  %v778_v62 = vpop.f32.mrb[5].mxu0  ;;  %1927 = vmatprep.mubr.f32.mxu1 %v2950_v23  ;;  %v898_v1 = vand.u32 4294901760, %v2950_v23 }
 0x168   :  { %v2959_v2 = vadd.f32 %v778_v62, %v202_v49  ;;  %v969_v49 = vand.u32 4294901760, %v968_v42 }
 0x169   :  { %v2962_v31 = vsub.f32 %v789_v21, %v2955_v55  ;;  %v790_v32 = vmax.f32 %v2296_v61, 0.0  ;;  %v899_v39 = vsub.f32 %v2950_v23, %v898_v1  ;;  %v989_v23 = vsub.f32 %v2767_v18, %v988_v36 }
 0x16a   :  { %v783_v45 = vpop.f32.mrb[6].mxu0  ;;  %1618 = vmax.xlane.f32.xlu1 %v2959_v2  ;;  %v995_v21 = vand.u32 4294901760, %v2780_v22  ;;  %v2135_v12 = vpack.c.bf16 %v976_v15, %v969_v49 }
 0x16b   :  { %v908_v37 = vand.u32 4294901760, %v2962_v31  ;;  %v2975_v46 = vand.u32 4294901760, %v790_v32  ;;  %v2300_v50 = vadd.f32 %v783_v45, %v211_v63  ;;  %v785_v51 = vpop.f32.mrb[7].mxu0  ;;  %1928 = vmatmul.mubr.f32.vlgmr.msra.gmra.mrb[8].mxu1 %v2962_v31  ;;  %v900_v58 = vand.u32 4294901760, %v899_v39 }
 0x16c   :  { %v2978_v43 = vadd.f32 %v785_v51, %v213_v9  ;;  %2194 = vmatpush3.bf16.msra.mxu1 %v2837_v17  ;;  %v1002_v63 = vand.u32 4294901760, %v2785_v10  ;;  %v990_v39 = vand.u32 4294901760, %v989_v23  ;;  %v996_v6 = vsub.f32 %v2780_v22, %v995_v21 }
 0x16d   :  { %v909_v35 = vsub.f32 %v2962_v31, %v908_v37  ;;  %v2985_v14 = vsub.f32 %v790_v32, %v2975_v46  ;;  %v791_v3 = vmax.f32 %v2300_v50, 0.0  ;;  %1851 = vmatprep.mubr.f32.mxu0 %v900_v58  ;;  %2196 = vmatprep.subr.bf16.mxu1 %v2851_v20  ;;  %v983_v32 = vand.u32 4294901760, %v982_v16 }
 0x16e   :  { %1620 = vmax.xlane.f32.xlu1 %v2978_v43  ;;  %v1003_v50 = vsub.f32 %v2785_v10, %v1002_v63  ;;  %v2239_v52 = vpack.c.bf16 %v1002_v63, %v995_v21 }
 0x16f   :  { %v910_v27 = vand.u32 4294901760, %v909_v35  ;;  %v2996_v61 = vand.u32 4294901760, %v791_v3  ;;  %1930 = vmatprep.mubr.f32.mxu1 %v2985_v14  ;;  %v918_v62 = vand.u32 4294901760, %v2985_v14  ;;  %v2139_v58 = vpack.c.bf16 %v990_v39, %v983_v32 }
 0x170   :  { %2198 = vmatpush3.bf16.msra.mxu1 %v2851_v20  ;;  %v997_v35 = vand.u32 4294901760, %v996_v6 }
 0x171   :  { %v927_v9 = vsub.f32 %v791_v3, %v2996_v61  ;;  %1852 = vmatmul.mubr.f32.vlgmr.msra.gmra.mrb[8].mxu0 %v910_v27  ;;  %2200 = vmatprep.subr.bf16.mxu1 %v2860_v25  ;;  %v919_v7 = vsub.f32 %v2985_v14, %v918_v62  ;;  %v1004_v14 = vand.u32 4294901760, %v1003_v50 }
 0x172   :  { %2130 = vmatpush3.bf16.msra.mxu0 %v2910_v54 }
 0x173   :  { %1931 = vmatmul.mubr.f32.gmra.mrb[10].mxu1 %v927_v9  ;;  %2132 = vmatprep.subr.bf16.mxu0 %v2131_v5  ;;  %v920_v42 = vand.u32 4294901760, %v919_v7  ;;  %v928_v45 = vand.u32 4294901760, %v927_v9 }
 0x174   :  { %2202 = vmatpush3.bf16.msra.mxu1 %v2860_v25  ;;  %1965 = vmatprep.mubr.f32.mxu1 %v898_v1  ;;  %v2143_v1 = vpack.c.bf16 %v1004_v14, %v997_v35 }
 0x175   :  { %1854 = vmatprep.mubr.f32.mxu0 %v920_v42  ;;  %2204 = vmatprep.subr.bf16.mxu1 %v2870_v28  ;;  %v929_v54 = vsub.f32 %v927_v9, %v928_v45 }
 0x176   :  { %2134 = vmatpush3.bf16.msra.mxu0 %v2131_v5  ;;  %v2227_v5 = vpack.c.bf16 %v960_v4, %v953_v60 }
 0x177   :  { %2136 = vmatprep.subr.bf16.mxu0 %v2135_v12  ;;  %v930_v51 = vand.u32 4294901760, %v929_v54 }
 0x178   :  { %2206 = vmatpush3.bf16.msra.mxu1 %v2870_v28 }
 0x179   :  { %1855 = vmatmul.mubr.f32.gmra.mrb[10].mxu0 %v930_v51  ;;  %2208 = vmatprep.subr.bf16.mxu1 %v2880_v29 }
 0x17a   :  { %2138 = vmatpush3.bf16.msra.mxu0 %v2135_v12  ;;  %1889 = vmatprep.mubr.f32.mxu0 %v2939_v44 }
 0x17b   :  { %2140 = vmatprep.subr.bf16.mxu0 %v2139_v58 }
 0x17c   :  { %2210 = vmatpush3.bf16.msra.mxu1 %v2880_v29 }
 0x17d   :  { %2212 = vmatprep.subr.bf16.mxu1 %v2893_v33 }
 0x17e   :  { %2142 = vmatpush3.bf16.msra.mxu0 %v2139_v58 }
 0x17f   :  { %2144 = vmatprep.subr.bf16.mxu0 %v2143_v1 }
 0x180   :  { %2214 = vmatpush3.bf16.msra.mxu1 %v2893_v33 }
 0x181   :  { %2216 = vmatprep.subr.bf16.mxu1 %v2897_v40 }
 0x182   :  { %2146 = vmatpush3.bf16.msra.mxu0 %v2143_v1 }
 0x183   :  { %2148 = vmatprep.subr.bf16.mxu0 %v2917_v47 }
 0x184   :  { %2218 = vmatpush3.bf16.msra.mxu1 %v2897_v40 }
 0x185   :  { %2220 = vmatprep.subr.bf16.mxu1 %v2904_v13 }
 0x186   :  { %2150 = vmatpush3.bf16.msra.mxu0 %v2917_v47  ;;  %v2231_v47 = vpack.c.bf16 %v974_v30, %v967_v24 }
 0x187   :  { %2152 = vmatprep.subr.bf16.mxu0 %v2919_v19 }
 0x188   :  { %2222 = vmatpush3.bf16.msra.mxu1 %v2904_v13 }
 0x189   :  { %2224 = vmatprep.subr.bf16.mxu1 %v2921_v26 }
 0x18a   :  { %2154 = vmatpush3.bf16.msra.mxu0 %v2919_v19 }
 0x18b   :  { %1966 = vmatmul.mubr.f32.vlgmr.msra.gmra.mrb[8].mxu1 %v908_v37  ;;  %2156 = vmatprep.subr.bf16.mxu0 %v2923_v0 }
 0x18c   :  { %1968 = vmatprep.mubr.f32.mxu1 %v918_v62  ;;  %2226 = vmatpush3.bf16.msra.mxu1 %v2921_v26 }
 0x18d   :  { %2228 = vmatprep.subr.bf16.mxu1 %v2227_v5 }
 0x18e   :  { %2158 = vmatpush3.bf16.msra.mxu0 %v2923_v0 }
 0x18f   :  { %1969 = vmatmul.mubr.f32.gmra.mrb[10].mxu1 %v928_v45 }
 0x190   :  { %2230 = vmatpush3.bf16.msra.mxu1 %v2227_v5  ;;  %2003 = vmatprep.mubr.f32.mxu1 %v2939_v44 }
 0x191   :  { %1890 = vmatmul.mubr.f32.vlgmr.msra.gmra.mrb[8].mxu0 %v2955_v55  ;;  %2232 = vmatprep.subr.bf16.mxu1 %v2231_v47 }
 0x192   :  { %1892 = vmatprep.mubr.f32.mxu0 %v2975_v46 }
 0x194   :  { %2234 = vmatpush3.bf16.msra.mxu1 %v2231_v47 }
 0x195   :  { %1893 = vmatmul.mubr.f32.gmra.mrb[10].mxu0 %v2996_v61  ;;  %2236 = vmatprep.subr.bf16.mxu1 %v2235_v48 }
 0x198   :  { %2238 = vmatpush3.bf16.msra.mxu1 %v2235_v48 }
 0x199   :  { %2240 = vmatprep.subr.bf16.mxu1 %v2239_v52 }
 0x19c   :  { %2242 = vmatpush3.bf16.msra.mxu1 %v2239_v52 }
 0x19d   :  { %2244 = vmatprep.subr.bf16.mxu1 %v2925_v34 }
 0x1a0   :  { %2246 = vmatpush3.bf16.msra.mxu1 %v2925_v34 }
 0x1a1   :  { %2248 = vmatprep.subr.bf16.mxu1 %v2927_v38 }
 0x1a4   :  { %2250 = vmatpush3.bf16.msra.mxu1 %v2927_v38 }
 0x1a5   :  { %2252 = vmatprep.subr.bf16.mxu1 %v2929_v59 }
 0x1a8   :  { %2254 = vmatpush3.bf16.msra.mxu1 %v2929_v59 }
 0x1a9   :  { %2256 = vmatprep.subr.bf16.mxu1 %v2837_v17 }
 0x1ab   :  { %2004 = vmatmul.mubr.f32.vlgmr.msra.gmra.mrb[8].mxu1 %v2955_v55 }
 0x1ac   :  { %2006 = vmatprep.mubr.f32.mxu1 %v2975_v46  ;;  %2258 = vmatpush3.bf16.msra.mxu1 %v2837_v17 }
 0x1ad   :  { %2260 = vmatprep.subr.bf16.mxu1 %v2851_v20 }
 0x1af   :  { %2007 = vmatmul.mubr.f32.gmra.mrb[10].mxu1 %v2996_v61 }
 0x1b0   :  { %2262 = vmatpush3.bf16.msra.mxu1 %v2851_v20  ;;  %2041 = vmatprep.mubr.f32.mxu1 %v2939_v44 }
 0x1b1   :  { %2264 = vmatprep.subr.bf16.mxu1 %v2860_v25 }
 0x1b4   :  { %2266 = vmatpush3.bf16.msra.mxu1 %v2860_v25 }
 0x1b5   :  { %2268 = vmatprep.subr.bf16.mxu1 %v2870_v28 }
 0x1b8   :  { %2270 = vmatpush3.bf16.msra.mxu1 %v2870_v28 }
 0x1b9   :  { %2272 = vmatprep.subr.bf16.mxu1 %v2880_v29 }
 0x1bc   :  { %2274 = vmatpush3.bf16.msra.mxu1 %v2880_v29 }
 0x1bd   :  { %2276 = vmatprep.subr.bf16.mxu1 %v2893_v33 }
 0x1c0   :  { %2278 = vmatpush3.bf16.msra.mxu1 %v2893_v33 }
 0x1c1   :  { %2280 = vmatprep.subr.bf16.mxu1 %v2897_v40 }
 0x1c4   :  { %2282 = vmatpush3.bf16.msra.mxu1 %v2897_v40 }
 0x1c5   :  { %2284 = vmatprep.subr.bf16.mxu1 %v2904_v13 }
 0x1c8   :  { %2286 = vmatpush3.bf16.msra.mxu1 %v2904_v13 }
 0x1cb   :  { %2042 = vmatmul.mubr.f32.vlgmr.msra.gmra.mrb[8].mxu1 %v2955_v55 }
 0x1cc   :  { %2044 = vmatprep.mubr.f32.mxu1 %v2975_v46 }
 0x1cf   :  { %2045 = vmatmul.mubr.f32.gmra.mrb[10].mxu1 %v2996_v61 }
 0x1ef   :  { %v1615_v22 = vpop.xlane.xlu0 %1614 }
 0x1f0   :  { %v1622_v56 = vsub.f32 %v2934_v53, %v1615_v22  ;;  %v1694_v53 = vld [vmem:[%s3138_s4] ss:$0 sm:$0xff] }
 0x1f2   :  { %v1626_v57 = vmul.f32 1.442695, %v1622_v56 }
 0x1f3   :  { %v1617_v41 = vpop.xlane.xlu0 %1616 }
 0x1f4   :  { %2368 = vpow2.f32 %v1626_v57  ;;  %v1623_v18 = vsub.f32 %v2941_v11, %v1617_v41 }
 0x1f6   :  { %v1628_v10 = vmul.f32 1.442695, %v1623_v18 }
 0x1f7   :  { %v1619_v17 = vpop.xlane.xlu1 %1618 }
 0x1f8   :  { %2370 = vpow2.f32 %v1628_v10  ;;  %v1624_v20 = vsub.f32 %v2959_v2, %v1619_v17 }
 0x1fa   :  { %v1630_v25 = vmul.f32 1.442695, %v1624_v20 }
 0x1fb   :  { %v1621_v28 = vpop.xlane.xlu1 %1620 }
 0x1fc   :  { %2372 = vpow2.f32 %v1630_v25  ;;  %v1625_v29 = vsub.f32 %v2978_v43, %v1621_v28 }
 0x1fe   :  { %v2369_v33 = vpop.eup %2368  ;;  %v1632_v40 = vmul.f32 1.442695, %v1625_v29 }
 0x1ff   :  { %1634 = vadd.xlane.f32.xlu0 %v2369_v33 }
 0x200   :  { %2374 = vpow2.f32 %v1632_v40 }
 0x202   :  { %v2371_v13 = vpop.eup %2370 }
 0x203   :  { %1636 = vadd.xlane.f32.xlu1 %v2371_v13 }
 0x206   :  { %v3087_v19 = vpop.eup %2372 }
 0x207   :  { %1638 = vadd.xlane.f32.xlu0 %v3087_v19 }
 0x20a   :  { %v2375_v26 = vpop.eup %2374 }
 0x20b   :  { %1640 = vadd.xlane.f32.xlu1 %v2375_v26 }
 0x264   :  { %v1891_v0 = vpop.f32.mrb[8].mxu0 }
 0x265   :  { %v1083_v34 = vpop.f32.mrb[9].mxu0  ;;  %v2303_v60 = vadd.f32 %v1891_v0, %v1694_v53 }
 0x266   :  { %v2305_v4 = vadd.f32 %v1694_v53, %v1083_v34 }
 0x268   :  { %v1894_v38 = vpop.f32.mrb[10].mxu0 }
 0x269   :  { %v1095_v59 = vpop.f32.mrb[11].mxu0  ;;  %v2307_v55 = vadd.f32 %v1894_v38, %v1694_v53 }
 0x26a   :  { %v2309_v31 = vadd.f32 %v1694_v53, %v1095_v59 }
 0x28c   :  { %v1635_v15 = vpop.xlane.xlu0 %1634 }
 0x290   :  { %v1637_v16 = vpop.xlane.xlu1 %1636 }
 0x294   :  { %v1639_v23 = vpop.xlane.xlu0 %1638 }
 0x298   :  { %v1641_v21 = vpop.xlane.xlu1 %1640 }
 0x29e   :  { %v2043_v44 = vpop.f32.mrb[8].mxu1 }
 0x29f   :  { %v2304_v11 = vadd.f32 %v2303_v60, %v2043_v44  ;;  %v1563_v24 = vpop.f32.mrb[9].mxu1 }
 0x2a0   :  { %v2306_v30 = vadd.f32 %v2305_v4, %v1563_v24 }
 0x2a1   :  { %v1696_v2 = vmul.f32 -1.442695, %v2304_v11 }
 0x2a2   :  { %v1695_v8 = vmul.f32 -1.442695, %v2306_v30  ;;  %v2046_v36 = vpop.f32.mrb[10].mxu1 }
 0x2a3   :  { %2376 = vpow2.f32 %v1696_v2  ;;  %v2308_v37 = vadd.f32 %v2307_v55, %v2046_v36  ;;  %v1575_v46 = vpop.f32.mrb[11].mxu1 }
 0x2a4   :  { %2378 = vpow2.f32 %v1695_v8  ;;  %v2310_v43 = vadd.f32 %v2309_v31, %v1575_v46 }
 0x2a5   :  { %v1698_v3 = vmul.f32 -1.442695, %v2308_v37 }
 0x2a6   :  { %v1697_v49 = vmul.f32 -1.442695, %v2310_v43 }
 0x2a7   :  { %2380 = vpow2.f32 %v1698_v3 }
 0x2a8   :  { %2382 = vpow2.f32 %v1697_v49 }
 0x2a9   :  { %2384 = vrcp.f32 %v1637_v16 }
 0x2aa   :  { %2386 = vrcp.f32 %v1635_v15 }
 0x2ab   :  { %2388 = vrcp.f32 %v1639_v23 }
 0x2ac   :  { %2390 = vrcp.f32 %v1641_v21 }
 0x2ad   :  { %v2377_v27 = vpop.eup %2376 }
 0x2ae   :  { %v2379_v61 = vpop.eup %2378  ;;  %v1598_v62 = vadd.f32 1.0, %v2377_v27 }
 0x2af   :  { %v1597_v63 = vadd.f32 1.0, %v2379_v61 }
 0x2b0   :  { %2392 = vrcp.f32 %v1598_v62 }
 0x2b1   :  { %v2381_v9 = vpop.eup %2380  ;;  %2394 = vrcp.f32 %v1597_v63 }
 0x2b2   :  { %v2383_v7 = vpop.eup %2382  ;;  %v1600_v12 = vadd.f32 1.0, %v2381_v9 }
 0x2b3   :  { %v1599_v32 = vadd.f32 1.0, %v2383_v7  ;;  %v2385_v39 = vpop.eup %2384 }
 0x2b4   :  { %2396 = vrcp.f32 %v1600_v12  ;;  %v2387_v42 = vpop.eup %2386  ;;  %v1645_v50 = vmul.f32 %v2385_v39, %v2371_v13 }
 0x2b5   :  { %2398 = vrcp.f32 %v1599_v32  ;;  %v2389_v45 = vpop.eup %2388  ;;  %v1643_v51 = vmul.f32 %v2387_v42, %v2369_v33 }
 0x2b6   :  { %v2391_v6 = vpop.eup %2390  ;;  %v1647_v47 = vmul.f32 %v2389_v45, %v3087_v19 }
 0x2b7   :  { %v1649_v1 = vmul.f32 %v2391_v6, %v2375_v26 }
 0x2ba   :  { %v2393_v54 = vpop.eup %2392 }
 0x2bb   :  { %v2395_v58 = vpop.eup %2394  ;;  %v1651_v35 = vmul.f32 %v2393_v54, %v1645_v50  ;;  %1611 = vst.msk [vmem:[%s3139_s5 + $0x8] sm:$0xff] %vm1609_vm1, %v2393_v54 }
 0x2bc   :  { %v1650_v14 = vmul.f32 %v2395_v58, %v1643_v51  ;;  %1610 = vst.msk [vmem:[%s3139_s5] sm:$0xff] %vm1609_vm1, %v2395_v58 }
 0x2bd   :  { %1656 = vadd.xlane.f32.xlu1 %v1651_v35 }
 0x2be   :  { %v2397_v5 = vpop.eup %2396  ;;  %1654 = vadd.xlane.f32.xlu0 %v1650_v14 }
 0x2bf   :  { %v2399_v48 = vpop.eup %2398  ;;  %v1653_v52 = vmul.f32 %v2397_v5, %v1649_v1  ;;  %1613 = vst.msk [vmem:[%s3139_s5 + $0x18] sm:$0xff] %vm1609_vm1, %v2397_v5 }
 0x2c0   :  { %v1652_v22 = vmul.f32 %v2399_v48, %v1647_v47  ;;  %1612 = vst.msk [vmem:[%s3139_s5 + $0x10] sm:$0xff] %vm1609_vm1, %v2399_v48 }
 0x2c1   :  { %1660 = vadd.xlane.f32.xlu1 %v1653_v52 }
 0x2c2   :  { %1658 = vadd.xlane.f32.xlu0 %v1652_v22 }
 0x2d2   :  { %1668 = vrot.lane.b32.xlu1 %v1645_v50, %s2478_s15 }
 0x2d6   :  { %1670 = vrot.lane.b32.xlu1 %v1647_v47, %s2478_s15 }
 0x2d8   :  { %1666 = vrot.lane.b32.xlu0 %v1643_v51, %s2478_s15 }
 0x2da   :  { %1672 = vrot.lane.b32.xlu1 %v1649_v1, %s2478_s15 }
 0x34a   :  { %v1657_v56 = vpop.xlane.xlu1 %1656 }
 0x34b   :  { %v1655_v57 = vpop.xlane.xlu0 %1654 }
 0x34e   :  { %v1661_v41 = vpop.xlane.xlu1 %1660 }
 0x34f   :  { %v1659_v18 = vpop.xlane.xlu0 %1658 }
 0x352   :  { %v1669_v10 = vpop.permute.xlu1 %1668 }
 0x353   :  { %1680 = vst.msk [vmem:[%s3139_s5 + $0x8] sm:$0xff] %vm1678_vm2, %v1669_v10  ;;  %v1667_v17 = vpop.permute.xlu0 %1666 }
 0x354   :  { %1685 = vst.msk [vmem:[%s3139_s5 + $0x8] sm:$0xff] %vm1683_vm3, %v1657_v56 }
 0x355   :  { %1679 = vst.msk [vmem:[%s3139_s5] sm:$0xff] %vm1678_vm2, %v1667_v17 }
 0x356   :  { %1684 = vst.msk [vmem:[%s3139_s5] sm:$0xff] %vm1683_vm3, %v1655_v57  ;;  %v1671_v20 = vpop.permute.xlu1 %1670 }
 0x357   :  { %1681 = vst.msk [vmem:[%s3139_s5 + $0x10] sm:$0xff] %vm1678_vm2, %v1671_v20 }
 0x358   :  { %1686 = vst.msk [vmem:[%s3139_s5 + $0x10] sm:$0xff] %vm1683_vm3, %v1659_v18 }
 0x35a   :  { %v1673_v25 = vpop.permute.xlu1 %1672 }
 0x35b   :  { %1682 = vst.msk [vmem:[%s3139_s5 + $0x18] sm:$0xff] %vm1678_vm2, %v1673_v25 }
 0x35c   :  { %1687 = vst.msk [vmem:[%s3139_s5 + $0x18] sm:$0xff] %vm1683_vm3, %v1661_v41 }
 0x35d   :  { %1692 = vsyncpa [#allocation3], 1 }
 0x35e   :  { %1693 = vsyncpa [#allocation5], 1 }

</bundles_post_ra>
